<compile_context>
chip_gen: v6e
topology: v6e:2x2x1
jax: 0.10.0
libtpu: 0.0.40
codegen_flags: <defaults>
</compile_context>

<pallas_src>
import jax
import jax.numpy as jnp
import numpy as np
from jax import lax
from jax.experimental import pallas as pl
from jax.experimental.pallas import tpu as pltpu

RATIO = 4  # channel-attention bottleneck ratio (matches the PyTorch module)


def _make_kernel(BB, C, HW_pad, HW_valid, CHUNK):
    """Build the kernel body with all sizes static (closed over)."""
    n_chunks = BB // CHUNK
    inv_hw = 1.0 / float(HW_valid)
    needs_mask = HW_pad != HW_valid

    def pool_chunk(x_ref, max_sc, avg_sc, s, size):
        xs = x_ref[pl.ds(s, size), :, :]                    # (size, C, HW_pad)
        if needs_mask:
            lane = lax.broadcasted_iota(jnp.int32, xs.shape, 2)
            xmax = jnp.where(lane < HW_valid, xs, -jnp.inf)
        else:
            xmax = xs
        max_sc[pl.ds(s, size), :] = jnp.max(xmax, axis=2)   # lane reduce (XLU)
        avg_sc[pl.ds(s, size), :] = jnp.sum(xs, axis=2) * inv_hw

    def gate_chunk(x_ref, gate_sc, out_ref, s, size):
        g = gate_sc[pl.ds(s, size), :]                      # (size, C)
        # Re-read x_ref here: nothing from the pooling phase stays live.
        out_ref[pl.ds(s, size), :, :] = g[:, :, None] * x_ref[pl.ds(s, size), :, :]

    def kernel(x_ref, w1t_ref, b1_ref, w2t_ref, b2_ref, out_ref,
               max_sc, avg_sc, gate_sc):
        # ---- Phase 1: chunked global max / avg pooling (bounded live vregs).
        if n_chunks == 1:
            pool_chunk(x_ref, max_sc, avg_sc, 0, BB)
        else:
            def body(ci, carry):
                pool_chunk(x_ref, max_sc, avg_sc, ci * CHUNK, CHUNK)
                return carry
            lax.fori_loop(0, n_chunks, body, 0, unroll=True)

        # ---- Phase 2: shared MLP on both pooled branches (tiny MXU dots).
        def fc(p):
            h = jnp.dot(p, w1t_ref[...], preferred_element_type=jnp.float32)
            h = jnp.maximum(h + b1_ref[...], 0.0)
            o = jnp.dot(h, w2t_ref[...], preferred_element_type=jnp.float32)
            return o + b2_ref[...]

        gate_sc[...] = jax.nn.sigmoid(fc(max_sc[...]) + fc(avg_sc[...]))

        # ---- Phase 3: chunked, lane-dense gating store.
        if n_chunks == 1:
            gate_chunk(x_ref, gate_sc, out_ref, 0, BB)
        else:
            def body2(ci, carry):
                gate_chunk(x_ref, gate_sc, out_ref, ci * CHUNK, CHUNK)
                return carry
            lax.fori_loop(0, n_chunks, body2, 0, unroll=True)

    return kernel


def channel_attention_forward(x, params, ratio=RATIO):
    """x: (B, C, H, W) float32 -> (B, C, H, W) float32 (sigmoid(fc(max)+fc(avg)) * x)."""
    B, C, H, W = x.shape
    HW = H * W
    Cr = max(C // ratio, 1)
    HW_pad = ((HW + 127) // 128) * 128                     # lane-dense guard

    x2 = x.reshape(B, C, HW).astype(jnp.float32)
    if HW_pad != HW:
        x2 = jnp.pad(x2, ((0, 0), (0, 0), (0, HW_pad - HW)))

    # ---- Batch-block sizing from a VMEM byte budget -------------------------
    elem_bytes = C * HW_pad * 4                            # bytes per batch element
    target_block_bytes = 2 << 20                           # ~2 MiB; 4x (dbl-buffered
                                                           # in+out) fits default scoped
                                                           # VMEM on v5e/v6e/v7x
    bb_budget = max(1, target_block_bytes // elem_bytes)
    bb_cap = max(1, B // 2)                                # >=2 grid steps -> v7x 2-TC
    BB = min(bb_budget, bb_cap, B)
    while B % BB:                                          # make BB a divisor of B
        BB -= 1

    # Inner chunk: batch elements whose x slice stays <= ~64 KiB (16 vregs) live.
    CHUNK = max(1, min(BB, (64 * 1024) // elem_bytes)) if elem_bytes <= 64 * 1024 else 1
    while BB % CHUNK:
        CHUNK -= 1
    # TODO(synk): for very large C*HW (single batch element > 64 KiB) also chunk
    # the pooling/gating along the channel axis.

    # PyTorch Linear stores weight as (out, in); pre-transpose for row-major dot.
    w1t = params["w1"].T.astype(jnp.float32)               # (C, Cr)
    w2t = params["w2"].T.astype(jnp.float32)               # (Cr, C)
    b1 = params["b1"].reshape(1, Cr).astype(jnp.float32)
    b2 = params["b2"].reshape(1, C).astype(jnp.float32)

    kernel = _make_kernel(BB, C, HW_pad, HW, CHUNK)

    weight_bytes = (w1t.size + w2t.size + b1.size + b2.size) * 4
    cost = pl.CostEstimate(
        flops=8 * B * C * Cr,                              # 2 branches x 2 layers
        transcendentals=B * C,                             # sigmoid
        bytes_accessed=2 * B * C * HW_pad * 4 + weight_bytes)

    out = pl.pallas_call(
        kernel,
        out_shape=jax.ShapeDtypeStruct((B, C, HW_pad), jnp.float32),
        grid=(B // BB,),
        in_specs=[
            pl.BlockSpec((BB, C, HW_pad), lambda i: (i, 0, 0)),  # x block
            pl.BlockSpec((C, Cr), lambda i: (0, 0)),             # fc1 weight^T
            pl.BlockSpec((1, Cr), lambda i: (0, 0)),             # fc1 bias
            pl.BlockSpec((Cr, C), lambda i: (0, 0)),             # fc2 weight^T
            pl.BlockSpec((1, C), lambda i: (0, 0)),              # fc2 bias
        ],
        out_specs=pl.BlockSpec((BB, C, HW_pad), lambda i: (i, 0, 0)),
        scratch_shapes=[
            pltpu.VMEM((BB, C), jnp.float32),   # max-pool result
            pltpu.VMEM((BB, C), jnp.float32),   # avg-pool result
            pltpu.VMEM((BB, C), jnp.float32),   # sigmoid gate
        ],
        compiler_params=pltpu.CompilerParams(
            dimension_semantics=(pltpu.PARALLEL,),   # megacore sharding on v7x
            vmem_limit_bytes=32 << 20),
        cost_estimate=cost,
    )(x2, w1t, b1, w2t, b2)

    if HW_pad != HW:
        out = out[:, :, :HW]
    return out.reshape(B, C, H, W)


# ---------------- pure-JAX reference (for correctness check) ----------------
def channel_attention_ref(x, p):
    cmax = jnp.max(x, axis=(2, 3))                         # (B, C)
    cavg = jnp.mean(x, axis=(2, 3))                        # (B, C)
    hi = jax.lax.Precision.HIGHEST

    def fc(v):
        h = jnp.maximum(jnp.dot(v, p["w1"].T, precision=hi) + p["b1"], 0.0)
        return jnp.dot(h, p["w2"].T, precision=hi) + p["b2"]

    gate = jax.nn.sigmoid(fc(cmax) + fc(cavg))             # (B, C)
    return gate[:, :, None, None] * x


def make_params(key, C, ratio=RATIO):
    k1, k2, k3, k4 = jax.random.split(key, 4)
    Cr = max(C // ratio, 1)
    return {
        "w1": 0.2 * jax.random.normal(k1, (Cr, C), jnp.float32),   # Linear(C, C//4)
        "b1": 0.1 * jax.random.normal(k2, (Cr,), jnp.float32),
        "w2": 0.2 * jax.random.normal(k3, (C, Cr), jnp.float32),   # Linear(C//4, C)
        "b2": 0.1 * jax.random.normal(k4, (C,), jnp.float32),
    }


if __name__ == "__main__":
    key = jax.random.PRNGKey(0)

    def check(B, C, H, W, k):
        kx, kp = jax.random.split(k)
        x = jax.random.normal(kx, (B, C, H, W), jnp.float32)
        p = make_params(kp, C)
        out = jax.block_until_ready(channel_attention_forward(x, p))
        ref = channel_attention_ref(x, p)
        assert out.shape == (B, C, H, W), out.shape
        np.testing.assert_allclose(np.asarray(out), np.asarray(ref),
                                   rtol=1e-3, atol=1e-3)

    k1, k2, k3 = jax.random.split(key, 3)
    check(2, 32, 16, 16, k1)    # spec-sized input (BB=1, 2 grid steps)
    check(16, 32, 16, 16, k2)   # exercises BB>1 + chunked pooling/gating loops
    check(2, 16, 14, 14, k3)    # exercises HW padding + masked max path
    print("KERNEL_OK")
</pallas_src>

<mosaic_0001>
module attributes {stable_mosaic.version = 11 : i64} {
  func.func @kernel(%arg0: i32, %arg1: memref<1x32x256xf32, #tpu.memory_space<vmem>>, %arg2: memref<32x8xf32, #tpu.memory_space<vmem>>, %arg3: memref<1x8xf32, #tpu.memory_space<vmem>>, %arg4: memref<8x32xf32, #tpu.memory_space<vmem>>, %arg5: memref<1x32xf32, #tpu.memory_space<vmem>>, %arg6: memref<1x32x256xf32, #tpu.memory_space<vmem>>, %arg7: memref<1x32xf32, #tpu.memory_space<vmem>>, %arg8: memref<1x32xf32, #tpu.memory_space<vmem>>, %arg9: memref<1x32xf32, #tpu.memory_space<vmem>>) attributes {dimension_semantics = [#tpu.dimension_semantics<parallel>], iteration_bounds = array<i64: 2>, scalar_prefetch = 0 : i64, scratch_operands = 3 : i64, tpu.core_type = #tpu.core_type<tc>, window_params = [{transform_indices = @transform_0, window_bounds = array<i64: 1, 32, 256>}, {pipeline_mode = #tpu.pipeline_mode<synchronous>, transform_indices = @transform_1, window_bounds = array<i64: 32, 8>}, {pipeline_mode = #tpu.pipeline_mode<synchronous>, transform_indices = @transform_2, window_bounds = array<i64: 1, 8>}, {pipeline_mode = #tpu.pipeline_mode<synchronous>, transform_indices = @transform_3, window_bounds = array<i64: 8, 32>}, {pipeline_mode = #tpu.pipeline_mode<synchronous>, transform_indices = @transform_4, window_bounds = array<i64: 1, 32>}, {transform_indices = @transform_5, window_bounds = array<i64: 1, 32, 256>}]} {
    %c0 = arith.constant 0 : index
    %c0_0 = arith.constant 0 : index
    %c0_1 = arith.constant 0 : index
    %0 = vector.load %arg1[%c0, %c0_0, %c0_1] : memref<1x32x256xf32, #tpu.memory_space<vmem>>, vector<1x32x256xf32>
    %cst = arith.constant dense<0xFF800000> : vector<1x32xf32>
    %1 = vector.multi_reduction <maximumf>, %0, %cst [2] : vector<1x32x256xf32> to vector<1x32xf32>
    %c0_2 = arith.constant 0 : index
    %c0_3 = arith.constant 0 : index
    %2 = vector.load %arg7[%c0_2, %c0_3] : memref<1x32xf32, #tpu.memory_space<vmem>>, vector<1x32xf32>
    tpu.vector_store %arg7[%c0_2, %c0_3], %1 {strides = array<i32>} : memref<1x32xf32, #tpu.memory_space<vmem>>, vector<1x32xf32>,
    %cst_4 = arith.constant dense<0.000000e+00> : vector<1x32xf32>
    %3 = vector.multi_reduction <add>, %0, %cst_4 [2] : vector<1x32x256xf32> to vector<1x32xf32>
    %cst_5 = arith.constant 3.906250e-03 : f32
    %4 = vector.broadcast %cst_5 : f32 to vector<1x32xf32>
    %5 = arith.mulf %3, %4 : vector<1x32xf32>
    %c0_6 = arith.constant 0 : index
    %c0_7 = arith.constant 0 : index
    %6 = vector.load %arg8[%c0_6, %c0_7] : memref<1x32xf32, #tpu.memory_space<vmem>>, vector<1x32xf32>
    tpu.vector_store %arg8[%c0_6, %c0_7], %5 {strides = array<i32>} : memref<1x32xf32, #tpu.memory_space<vmem>>, vector<1x32xf32>,
    %c0_8 = arith.constant 0 : index
    %c0_9 = arith.constant 0 : index
    %7 = vector.load %arg7[%c0_8, %c0_9] : memref<1x32xf32, #tpu.memory_space<vmem>>, vector<1x32xf32>
    %c0_10 = arith.constant 0 : index
    %c0_11 = arith.constant 0 : index
    %8 = vector.load %arg2[%c0_10, %c0_11] : memref<32x8xf32, #tpu.memory_space<vmem>>, vector<32x8xf32>
    %cst_12 = arith.constant dense<0.000000e+00> : vector<1x8xf32>
    %9 = tpu.matmul %7, %8, %cst_12 {dimension_numbers = #tpu.dot_dimension_numbers<[1], [0], [0], [1], [0, 0, 1, 1], [], []>} : vector<1x32xf32>, vector<32x8xf32>, vector<1x8xf32> -> vector<1x8xf32>
    %c0_13 = arith.constant 0 : index
    %c0_14 = arith.constant 0 : index
    %10 = vector.load %arg3[%c0_13, %c0_14] : memref<1x8xf32, #tpu.memory_space<vmem>>, vector<1x8xf32>
    %11 = arith.addf %9, %10 : vector<1x8xf32>
    %cst_15 = arith.constant 0.000000e+00 : f32
    %12 = vector.broadcast %cst_15 : f32 to vector<1x8xf32>
    %13 = arith.maximumf %11, %12 : vector<1x8xf32>
    %c0_16 = arith.constant 0 : index
    %c0_17 = arith.constant 0 : index
    %14 = vector.load %arg4[%c0_16, %c0_17] : memref<8x32xf32, #tpu.memory_space<vmem>>, vector<8x32xf32>
    %cst_18 = arith.constant dense<0.000000e+00> : vector<1x32xf32>
    %15 = tpu.matmul %13, %14, %cst_18 {dimension_numbers = #tpu.dot_dimension_numbers<[1], [0], [0], [1], [0, 0, 1, 1], [], []>} : vector<1x8xf32>, vector<8x32xf32>, vector<1x32xf32> -> vector<1x32xf32>
    %c0_19 = arith.constant 0 : index
    %c0_20 = arith.constant 0 : index
    %16 = vector.load %arg5[%c0_19, %c0_20] : memref<1x32xf32, #tpu.memory_space<vmem>>, vector<1x32xf32>
    %17 = arith.addf %15, %16 : vector<1x32xf32>
    %c0_21 = arith.constant 0 : index
    %c0_22 = arith.constant 0 : index
    %18 = vector.load %arg8[%c0_21, %c0_22] : memref<1x32xf32, #tpu.memory_space<vmem>>, vector<1x32xf32>
    %c0_23 = arith.constant 0 : index
    %c0_24 = arith.constant 0 : index
    %19 = vector.load %arg2[%c0_23, %c0_24] : memref<32x8xf32, #tpu.memory_space<vmem>>, vector<32x8xf32>
    %cst_25 = arith.constant dense<0.000000e+00> : vector<1x8xf32>
    %20 = tpu.matmul %18, %19, %cst_25 {dimension_numbers = #tpu.dot_dimension_numbers<[1], [0], [0], [1], [0, 0, 1, 1], [], []>} : vector<1x32xf32>, vector<32x8xf32>, vector<1x8xf32> -> vector<1x8xf32>
    %c0_26 = arith.constant 0 : index
    %c0_27 = arith.constant 0 : index
    %21 = vector.load %arg3[%c0_26, %c0_27] : memref<1x8xf32, #tpu.memory_space<vmem>>, vector<1x8xf32>
    %22 = arith.addf %20, %21 : vector<1x8xf32>
    %cst_28 = arith.constant 0.000000e+00 : f32
    %23 = vector.broadcast %cst_28 : f32 to vector<1x8xf32>
    %24 = arith.maximumf %22, %23 : vector<1x8xf32>
    %c0_29 = arith.constant 0 : index
    %c0_30 = arith.constant 0 : index
    %25 = vector.load %arg4[%c0_29, %c0_30] : memref<8x32xf32, #tpu.memory_space<vmem>>, vector<8x32xf32>
    %cst_31 = arith.constant dense<0.000000e+00> : vector<1x32xf32>
    %26 = tpu.matmul %24, %25, %cst_31 {dimension_numbers = #tpu.dot_dimension_numbers<[1], [0], [0], [1], [0, 0, 1, 1], [], []>} : vector<1x8xf32>, vector<8x32xf32>, vector<1x32xf32> -> vector<1x32xf32>
    %c0_32 = arith.constant 0 : index
    %c0_33 = arith.constant 0 : index
    %27 = vector.load %arg5[%c0_32, %c0_33] : memref<1x32xf32, #tpu.memory_space<vmem>>, vector<1x32xf32>
    %28 = arith.addf %26, %27 : vector<1x32xf32>
    %29 = arith.addf %17, %28 : vector<1x32xf32>
    %30 = arith.negf %29 : vector<1x32xf32>
    %31 = math.exp %30 : vector<1x32xf32>
    %cst_34 = arith.constant 1.000000e+00 : f32
    %32 = vector.broadcast %cst_34 : f32 to vector<1x32xf32>
    %33 = arith.addf %32, %31 : vector<1x32xf32>
    %34 = arith.divf %32, %33 : vector<1x32xf32>
    %c0_35 = arith.constant 0 : index
    %c0_36 = arith.constant 0 : index
    %35 = vector.load %arg9[%c0_35, %c0_36] : memref<1x32xf32, #tpu.memory_space<vmem>>, vector<1x32xf32>
    tpu.vector_store %arg9[%c0_35, %c0_36], %34 {strides = array<i32>} : memref<1x32xf32, #tpu.memory_space<vmem>>, vector<1x32xf32>,
    %c0_37 = arith.constant 0 : index
    %c0_38 = arith.constant 0 : index
    %36 = vector.load %arg9[%c0_37, %c0_38] : memref<1x32xf32, #tpu.memory_space<vmem>>, vector<1x32xf32>
    %37 = vector.shape_cast %36 : vector<1x32xf32> to vector<1x32x1xf32>
    %c0_39 = arith.constant 0 : index
    %c0_40 = arith.constant 0 : index
    %c0_41 = arith.constant 0 : index
    %38 = vector.load %arg1[%c0_39, %c0_40, %c0_41] : memref<1x32x256xf32, #tpu.memory_space<vmem>>, vector<1x32x256xf32>
    %39 = vector.broadcast %37 : vector<1x32x1xf32> to vector<1x32x256xf32>
    %40 = arith.mulf %39, %38 : vector<1x32x256xf32>
    %c0_42 = arith.constant 0 : index
    %c0_43 = arith.constant 0 : index
    %c0_44 = arith.constant 0 : index
    %41 = vector.load %arg6[%c0_42, %c0_43, %c0_44] : memref<1x32x256xf32, #tpu.memory_space<vmem>>, vector<1x32x256xf32>
    tpu.vector_store %arg6[%c0_42, %c0_43, %c0_44], %40 {strides = array<i32>} : memref<1x32x256xf32, #tpu.memory_space<vmem>>, vector<1x32x256xf32>,
    return
  }
  func.func @transform_0(%arg0: i32) -> (i32, i32, i32) {
    %c0_i32 = arith.constant 0 : i32
    %c0_i32_0 = arith.constant 0 : i32
    %c0_i32_1 = arith.constant 0 : i32
    return %arg0, %c0_i32, %c0_i32_0 : i32, i32, i32
  }
  func.func @transform_1(%arg0: i32) -> (i32, i32) {
    %c0_i32 = arith.constant 0 : i32
    %c0_i32_0 = arith.constant 0 : i32
    %c0_i32_1 = arith.constant 0 : i32
    return %c0_i32, %c0_i32_0 : i32, i32
  }
  func.func @transform_2(%arg0: i32) -> (i32, i32) {
    %c0_i32 = arith.constant 0 : i32
    %c0_i32_0 = arith.constant 0 : i32
    %c0_i32_1 = arith.constant 0 : i32
    return %c0_i32, %c0_i32_0 : i32, i32
  }
  func.func @transform_3(%arg0: i32) -> (i32, i32) {
    %c0_i32 = arith.constant 0 : i32
    %c0_i32_0 = arith.constant 0 : i32
    %c0_i32_1 = arith.constant 0 : i32
    return %c0_i32, %c0_i32_0 : i32, i32
  }
  func.func @transform_4(%arg0: i32) -> (i32, i32) {
    %c0_i32 = arith.constant 0 : i32
    %c0_i32_0 = arith.constant 0 : i32
    %c0_i32_1 = arith.constant 0 : i32
    return %c0_i32, %c0_i32_0 : i32, i32
  }
  func.func @transform_5(%arg0: i32) -> (i32, i32, i32) {
    %c0_i32 = arith.constant 0 : i32
    %c0_i32_0 = arith.constant 0 : i32
    %c0_i32_1 = arith.constant 0 : i32
    return %arg0, %c0_i32, %c0_i32_0 : i32, i32, i32
  }
}

</mosaic_0001>

<bundles_post_ra>
// kernel: tpu_custom_call.1
= control target key start
LH: loop header
LB: loop body
LE: loop exit
PB: predicated region body
PF: predicated region fallthrough
CT: control target
= control target key end

     0   :  { %10 = vsyncpa [#allocation6], 0  ;;  %s1304_s0 = inlined_call_operand.hbm [shape: f32[2,32,256], index: 0, kind: input, shape index: {}]   ;;  %s1305_s1 = inlined_call_operand.vmem [shape: f32[32,8], index: 1, kind: input, shape index: {}]   ;;  %s1306_s2 = inlined_call_operand.vmem [shape: f32[1,8], index: 2, kind: input, shape index: {}]   ;;  %s1307_s3 = inlined_call_operand.vmem [shape: f32[8,32], index: 3, kind: input, shape index: {}]   ;;  %s1308_s4 = inlined_call_operand.vmem [shape: f32[1,32], index: 4, kind: input, shape index: {}]   ;;  %s1309_s5 = inlined_call_operand.hbm [shape: f32[2,32,256], index: 5, kind: output, shape index: {}]  }
   0x1   :  { %12 = vsyncpa [#allocation6 + $0x1], 0 }
   0x2   :  { %13 = vsyncpa [#allocation7], 0 }
   0x3   :  { %15 = vsyncpa [#allocation7 + $0x1], 0  ;;  %s1038_s18 = smov 0   ;;  %s1040_s19 = smov 0  }
   0x4   :  { %s1042_s20 = smov 0   ;;  %s1044_s21 = smov 0  }
   0x5 LB: > { %s1059_s22 = sadd.s32 4294967295, %s998_s21   ;;  %s782_s23 = sadd.s32 4294967294, %s998_s21   ;;  %s998_s21 = sphi %s1044_s21, %s1324_s21   ;;  %s994_s20 = sphi %s1042_s20, %s1323_s20   ;;  %s990_s19 = sphi %s1040_s19, %s1322_s19   ;;  %s986_s18 = sphi %s1038_s18, %s1321_s18  }
   0x6   : > { %s1063_s24 = sadd.s32 1, %s998_s21   ;;  %s28_s25 = sadd.s32 1, %s994_s20 }
   0x7   : > { %s25_s26 = ssub.s32 %s998_s21, %s1063_s24  ;;  %p35_p0 = scmp.ne.s32.totalorder %s994_s20, %s990_s19 }
   0x8   : > { %p26_p1 = scmp.eq.s32.totalorder %s25_s26, 0  ;;  %p36_p2 = scmp.eq.s32.totalorder %s998_s21, 0 }
   0x9   : > { %p41_p3 = scmp.ne.s32.totalorder %s990_s19, %s986_s18  ;;  %p42_p4 = scmp.eq.s32.totalorder %s1059_s22, 0 }
   0xa   : > { %s1075_s27 = scalar_select %p26_p1, %s994_s20, %s28_s25  }
   0xb   : > { %p1077_p5 = por %p36_p2, %p35_p0  ;;  %p1081_p6 = por %p42_p4, %p41_p3 }
   0xc   : > { %p149_p7 = scmp.eq.s32.totalorder %s1059_s22, 1  ;;  %p155_p8 = scmp.eq.s32.totalorder %s782_s23, 1 }
   0xd   : > { %s1313_s29 = scalar_select %p1081_p6, 1, 0 }
   0xe   : > { %p862_p10 = scmp.lt.s32.totalorder %s998_s21, 2  ;;  %p1088_p11 = por %p149_p7, %p35_p0 }
   0xf   : > { %p1092_p12 = por %p155_p8, %p41_p3  ;;  %s187_s7 = sand.u32 1, %s994_s20  }
  0x10   : > { %s1314_s30 = scalar_select %p1088_p11, 1, 0 }
  0x11   : > { %s1315_s6 = scalar_select %p1092_p12, 1, 0 }
  0x12   : > { %s802_s8 = sshll.u32 %s998_s21, 10  ;;  %s785_s9 = sshll.u32 %s187_s7, 6 }
  0x13   : > { %s1101_s12 = scalar_lea.hbm %s1304_s0, %s802_s8  ;;  %s191_s13 = scalar_lea.vmem [#allocation5], %s785_s9 }
  0x14   : > { %s198_s14 = sshll.u32 %s191_s13, 4  ;;  %p1105_p13 = pnand %p862_p10, %p1077_p5  ;;  %s1109_s14 = int_to_ptr.vmem [resolvable:$true] %s198_s14 }
  0x15   : > { %s1111_s16 = scalar_lea.sflag [#allocation6], %s187_s7  ;;  %s906_s17 = scalar_lea.hbm %s1101_s12, 1024 }
  0x16   : > { %p907_p0 = scmp.ne.s32.totalorder %s1101_s12, %s906_s17  ;;  %p908_p1 = pneg %p1105_p13 }
  0x17   : > { %s911_s26 = scalar_lea.hbm %s1304_s0, 2048  ;;  %p912_p4 = scmp.lt.s32.totalorder %s1101_s12, %s1304_s0 }
  0x18   : > { %p909_p2 = pnand %p908_p1, %p907_p0  ;;  %p913_p5 = scmp.lt.s32.totalorder %s911_s26, %s906_s17 }
  0x1a   : > { %p910_p3 = pneg %p909_p2  ;;  %p914_p7 = por %p913_p5, %p912_p4 }
  0x1c   : > { %p915_p8 = pnand %p914_p7, %p910_p3 }
  0x1e   : > { %918 = shalt.err (!%p915_p8)
}
  0x1f   : > { %s919_s7 = scalar_lea.vmem %s1109_s14, 1024  ;;  %s1000_s9 = smov [#allocation5]  }
  0x20   : > { %p920_p10 = scmp.ne.s32.totalorder %s1109_s14, %s919_s7  ;;  %s924_s10 = sshll.u32 %s1000_s9, 4  ;;  %s925_s10 = int_to_ptr.vmem [resolvable:$false] %s924_s10 }
  0x21   : > { %s926_s11 = scalar_lea.vmem %s925_s10, 2048  ;;  %p927_p2 = scmp.lt.s32.totalorder %s1109_s14, %s925_s10 }
  0x22   : > { %p922_p9 = pnand %p920_p10, %p908_p1  ;;  %p928_p12 = scmp.lt.s32.totalorder %s926_s11, %s919_s7 }
  0x24   : > { %p923_p0 = pneg %p922_p9  ;;  %p929_p11 = por %p928_p12, %p927_p2 }
  0x26   : > { %p930_p6 = pnand %p929_p11, %p923_p0 }
  0x28   : > { %933 = shalt.err (!%p930_p6)
}
  0x29   : > { %s1001_s13 = smov 256   ;;  %s1002_s17 = smov 16  }
  0x2a   : > { %857 = dma.hbm_to_vmem [thread:$0]  (!%p1105_p13), %s1101_s12, 1024, %s1109_s14, %s1111_s16, %s1001_s13, %s1001_s13, %s1002_s17  }
  0x2b   : > { %p788_p9 = scmp.ge.s32.totalorder %s998_s21, 1  ;;  %p206_p1 = scmp.lt.s32.totalorder %s998_s21, 3 }
  0x2d   : > { %p207_p3 = pnand %p788_p9, %p206_p1 }
  0x2e   : > { %s1135_s23 = sand.u32 (!%p207_p3), 1, %s990_s19   ;;  %p1317_p6 = scmp.ne.s32.totalorder (!%p207_p3), %s1313_s29, 0 }
  0x2f   : > { %210 = sbr.rel (%p207_p3) target bundleno = 989 (0x3dd), region = 40  ;;  %s789_s25 = sshll.u32 (!%p207_p3), %s1135_s23, 6 }
  0x30   : > { %s213_s26 = scalar_lea.sflag (!%p207_p3), [#allocation6], %s1135_s23  ;;  %s216_s28 = scalar_lea.vmem (!%p207_p3), [#allocation5], %s789_s25 }
  0x34   : > { %977 = dma.done.wait (%p1317_p6), %s213_s26, 1024  }
  0x35   : > { %979 = vsyncadd (%p1317_p6), %s213_s26, 4294966272  ;;  %v1145_v0 = vld [vmem:[%s216_s28] sm:$0xff]  ;;  %v1147_v1 = vld [vmem:[%s216_s28 + $0x8] sm:$0xff]  ;;  %v1003_v12 = vmov 0.0   ;;  %vm1004_vm0 = vmmov 0   ;;  %v267_v21 = vlaneseq  ;;  %vm278_vm1 = vcmask 130112  }
  0x36   : > { %v1149_v2 = vld [vmem:[%s216_s28 + $0x20] sm:$0xff]  ;;  %v251_v3 = vmax.f32 %v1145_v0, %v1147_v1  ;;  %v1153_v4 = vld [vmem:[%s216_s28 + $0x28] sm:$0xff]  ;;  %v1155_v5 = vld [vmem:[%s216_s28 + $0x10] sm:$0xff]  ;;  %818 = vmatprep.subr.mxu0 %v1003_v12  ;;  %829 = vmatprep.subr.mxu1 %v1003_v12  ;;  %v297_v17 = vadd.f32 %v1147_v1, %v1145_v0  ;;  %vm285_vm2 = vcmask 195712   ;;  %vm292_vm3 = vcmask 261312   ;;  %s242_s29 = scalar_lea.vmem [#allocation8], %s789_s25 }
  0x37   : > { %v1157_v6 = vld [vmem:[%s216_s28 + $0x18] sm:$0xff]  ;;  %v257_v7 = vmax.f32 %v1149_v2, %v1153_v4  ;;  %v1161_v8 = vld [vmem:[%s216_s28 + $0x30] sm:$0xff]  ;;  %826 = vmatprep.mubr.msk.f32.mxu0 %vm1004_vm0, %v1003_v12  ;;  %v1188_v15 = vld [vmem:[%s1305_s1 + $0x8] sm:$0xff]  ;;  %831 = vmatprep.mubr.msk.f32.mxu1 %vm1004_vm0, %v1003_v12  ;;  %v303_v19 = vadd.f32 %v1153_v4, %v1149_v2  ;;  %v268_v22 = vand.u32 127, %v267_v21  ;;  %v270_v23 = vshrl.u32 %v267_v21, 7  ;;  %s709_s12 = sshll.u32 %s242_s29, 4  ;;  %s1254_s12 = int_to_ptr.vmem [resolvable:$true] %s709_s12 }
  0x38   : > { %v1163_v9 = vld [vmem:[%s216_s28 + $0x38] sm:$0xff]  ;;  %252 = vmax.xlane.f32.xlu0 %v251_v3  ;;  %v254_v10 = vmax.f32 %v1155_v5, %v1157_v6  ;;  %v1178_v14 = vld [vmem:[%s1305_s1 + $0x10] sm:$0xff]  ;;  %v300_v18 = vadd.f32 %v1157_v6, %v1155_v5  ;;  %vm295_vm4 = vcmask 253952   ;;  %vm344_vm5 = vcmask 261120   ;;  %s803_s14 = sshll.u32 %s1059_s22, 10  ;;  %s696_s22 = scalar_lea.sflag [#allocation7], %s1135_s23 }
  0x39   : > { %258 = vmax.xlane.f32.xlu1 %v257_v7  ;;  %v260_v11 = vmax.f32 %v1161_v8, %v1163_v9  ;;  %v1173_v13 = vld [vmem:[%s1305_s1 + $0x18] sm:$0xff]  ;;  %v1197_v16 = vld [vmem:[%s1305_s1] sm:$0xff]  ;;  %v306_v20 = vadd.f32 %v1163_v9, %v1161_v8  ;;  %v273_v24 = vadd.s32 4294967288, %v268_v22  ;;  %v280_v25 = vadd.s32 4294967280, %v268_v22  ;;  %s1259_s16 = scalar_lea.hbm %s1309_s5, %s803_s14  ;;  %s934_s8 = scalar_lea.vmem %s1254_s12, 1024 }
  0x3a   : > { %819 = vmatpush3.msra.mxu0 %v1173_v13  ;;  %v287_v26 = vadd.s32 4294967272, %v268_v22  ;;  %v271_v28 = vsub.s32 %v268_v22, %v270_v23  ;;  %v419_v58 = vld [vmem:[%s1307_s3] sm:$0xff]  ;;  %vm421_vm6 = vcmask 64512   ;;  %p935_p11 = scmp.ne.s32.totalorder %s1254_s12, %s934_s8  ;;  %p1318_p12 = scmp.ne.s32.totalorder %s1314_s30, 0 }
  0x3b   : > { %820 = vmatprep.subr.mxu0 %v1003_v12  ;;  %v276_v30 = vsub.s32 %v273_v24, %v270_v23  ;;  %v283_v31 = vsub.s32 %v280_v25, %v270_v23  ;;  %830 = vmatpush3.msra.mxu1 %v419_v58  ;;  %v343_v59 = vld [vmem:[%s1306_s2] sm:$0x1]  ;;  %s1005_s7 = smov [#allocation8]  }
  0x3c   : > { %255 = vmax.xlane.f32.xlu0 %v254_v10  ;;  %821 = vmatpush3.msra.mxu0 %v1178_v14  ;;  %v290_v32 = vsub.s32 %v287_v26, %v270_v23  ;;  %p936_p13 = pnand %p935_p11, %p1318_p12  ;;  %s938_s9 = sshll.u32 %s1005_s7, 4  ;;  %s939_s9 = int_to_ptr.vmem [resolvable:$false] %s938_s9 }
  0x3d   : > { %261 = vmax.xlane.f32.xlu1 %v260_v11  ;;  %822 = vmatprep.subr.mxu0 %v1003_v12  ;;  %s940_s10 = scalar_lea.vmem %s939_s9, 2048  ;;  %p941_p5 = scmp.lt.s32.totalorder %s1254_s12, %s939_s9 }
  0x3e   : > { %823 = vmatpush3.msra.mxu0 %v1188_v15  ;;  %834 = vmatprep.subr.mxu1 %v1003_v12  ;;  %p937_p4 = pneg %p936_p13  ;;  %p942_p7 = scmp.lt.s32.totalorder %s940_s10, %s934_s8 }
  0x3f   : > { %824 = vmatprep.subr.mxu0 %v1003_v12 }
  0x40   : > { %825 = vmatpush3.msra.mxu0 %v1197_v16  ;;  %298 = vadd.xlane.f32.xlu0 %v297_v17  ;;  %p943_p8 = por %p942_p7, %p941_p5 }
  0x41   : > { %845 = vmatprep.subr.mxu0 %v1003_v12  ;;  %301 = vadd.xlane.f32.xlu1 %v300_v18 }
  0x42   : > { %p944_p10 = pnand %p943_p8, %p937_p4 }
  0x44   : > { %304 = vadd.xlane.f32.xlu0 %v303_v19 }
  0x45   : > { %307 = vadd.xlane.f32.xlu1 %v306_v20 }
  0xc1   : > { %v253_v27 = vpop.xlane.xlu0 %252 }
  0xc2   : > { %v259_v29 = vpop.xlane.xlu1 %258  ;;  %v272_v34 = vrot.slane %v253_v27, %v271_v28 }
  0xc3   : > { %v284_v37 = vrot.slane %v259_v29, %v283_v31 }
  0xc5   : > { %v256_v33 = vpop.xlane.xlu0 %255 }
  0xc6   : > { %v277_v35 = vrot.slane %v256_v33, %v276_v30  ;;  %v262_v36 = vpop.xlane.xlu1 %261 }
  0xc7   : > { %v291_v38 = vrot.slane %v262_v36, %v290_v32 }
  0xc8   : > { %v279_v39 = vsel %vm278_vm1, %v277_v35, %v272_v34 }
  0xc9   : > { %v286_v40 = vsel %vm285_vm2, %v284_v37, %v279_v39  ;;  %v299_v43 = vpop.xlane.xlu0 %298 }
  0xca   : > { %v293_v41 = vsel %vm292_vm3, %v291_v38, %v286_v40  ;;  %v302_v44 = vpop.xlane.xlu1 %301  ;;  %v309_v45 = vmul.f32 0.00390625, %v299_v43 }
  0xcb   : > { %296 = vst.msk [vmem:[#allocation2] sm:$0x1] %vm295_vm4, %v293_v41  ;;  %v310_v46 = vmul.f32 0.00390625, %v302_v44 }
  0xcc   : > { %v320_v47 = vrot.slane %v309_v45, %v271_v28 }
  0xcd   : > { %v324_v48 = vrot.slane %v310_v46, %v276_v30  ;;  %v305_v49 = vpop.xlane.xlu0 %304 }
  0xce   : > { %v308_v50 = vpop.xlane.xlu1 %307  ;;  %v311_v51 = vmul.f32 0.00390625, %v305_v49 }
  0xcf   : > { %v312_v52 = vmul.f32 0.00390625, %v308_v50  ;;  %v325_v53 = vsel %vm278_vm1, %v324_v48, %v320_v47 }
  0xd0   : > { %v329_v54 = vrot.slane %v311_v51, %v283_v31 }
  0xd1   : > { %v334_v55 = vrot.slane %v312_v52, %v290_v32 }
  0xd2   : > { %v338_v42 = vld [vmem:[#allocation2] sm:$0x1]  ;;  %v330_v56 = vsel %vm285_vm2, %v329_v54, %v325_v53 }
  0xd3   : > { %827 = vmatmul.mubr.msk.f32.vlgmr.msra.gmra.mxu0 %vm344_vm5, %v338_v42  ;;  %v335_v57 = vsel %vm292_vm3, %v334_v55, %v330_v56 }
  0xd4   : > { %847 = vmatprep.mubr.msk.f32.mxu0 %vm1004_vm0, %v1003_v12  ;;  %337 = vst.msk [vmem:[#allocation3] sm:$0x1] %vm295_vm4, %v335_v57  ;;  %846 = vmatpush3.msra.mxu0 %v419_v58 }
  0xdb   : > { %v495_v3 = vld [vmem:[#allocation3] sm:$0x1] }
 0x193   : > { %v414_v60 = vpop.f32.mrf.mxu0 }
 0x194   : > { %v415_v61 = vadd.f32 %v414_v60, %v343_v59 }
 0x195   : > { %v828_v62 = vpop.f32.mrf.mxu0 }
 0x196   : > { %v418_v63 = vmax.f32 %v415_v61, 0.0 }
 0x198   : > { %832 = vmatmul.mubr.msk.f32.vlgmr.msra.gmra.mxu1 %vm421_vm6, %v418_v63 }
 0x199   : > { %835 = vmatpush3.msra.mxu1 %v1173_v13  ;;  %842 = vmatprep.mubr.msk.f32.mxu1 %vm1004_vm0, %v1003_v12 }
 0x19a   : > { %836 = vmatprep.subr.mxu1 %v1003_v12 }
 0x19b   : > { %837 = vmatpush3.msra.mxu1 %v1178_v14  ;;  %v420_v14 = vld [vmem:[%s1308_s4] sm:$0x1] }
 0x19c   : > { %838 = vmatprep.subr.mxu1 %v1003_v12 }
 0x19d   : > { %839 = vmatpush3.msra.mxu1 %v1188_v15 }
 0x19e   : > { %840 = vmatprep.subr.mxu1 %v1003_v12 }
 0x19f   : > { %841 = vmatpush3.msra.mxu1 %v1197_v16 }
 0x1a0   : > { %843 = vmatmul.mubr.msk.f32.vlgmr.msra.gmra.mxu1 %vm344_vm5, %v495_v3 }
 0x258   : > { %v491_v7 = vpop.f32.mrf.mxu1 }
 0x259   : > { %v492_v19 = vadd.f32 %v491_v7, %v420_v14 }
 0x25a   : > { %v833_v10 = vpop.f32.mrf.mxu1 }
 0x260   : > { %v565_v11 = vpop.f32.mrf.mxu1 }
 0x261   : > { %v566_v13 = vadd.f32 %v565_v11, %v343_v59 }
 0x262   : > { %v844_v17 = vpop.f32.mrf.mxu1 }
 0x263   : > { %v569_v18 = vmax.f32 %v566_v13, 0.0 }
 0x265   : > { %848 = vmatmul.mubr.msk.f32.vlgmr.msra.gmra.mxu0 %vm421_vm6, %v569_v18 }
 0x325   : > { %v639_v15 = vpop.f32.mrf.mxu0 }
 0x326   : > { %v640_v12 = vadd.f32 %v639_v15, %v420_v14 }
 0x327   : > { %v849_v20 = vpop.f32.mrf.mxu0 }
 0x328   : > { %v643_v16 = vadd.f32 %v640_v12, %v492_v19 }
 0x32a   : > { %v795_v21 = vmul.f32 -1.442695, %v643_v16 }
 0x32c   : > { %902 = vpow2.f32 %v795_v21 }
 0x339   : > { %v903_v22 = vpop.eup %902 }
 0x33a   : > { %v647_v23 = vadd.f32 1.0, %v903_v22 }
 0x33c   : > { %904 = vrcp.f32 %v647_v23 }
 0x349   : > { %v905_v24 = vpop.eup %904 }
 0x34a   : > { %650 = vst.msk [vmem:[#allocation4] sm:$0x1] %vm295_vm4, %v905_v24 }
 0x351   : > { %v796_v25 = vld [vmem:[#allocation4] ss:$0 sm:$0xff] }
 0x352   : > { %661 = vbcast.lane.b32.xlu1 %v796_v25, 264  ;;  %657 = vbcast.lane.b32.xlu0 %v796_v25, 256 }
 0x356   : > { %665 = vbcast.lane.b32.xlu1 %v796_v25, 272 }
 0x35a   : > { %669 = vbcast.lane.b32.xlu1 %v796_v25, 280 }
 0x3c4   : > { %v662_v26 = vpop.permute.xlu1 %661  ;;  %v658_v27 = vpop.permute.xlu0 %657 }
 0x3c5   : > { %v681_v28 = vmul.f32 %v662_v26, %v1155_v5  ;;  %v682_v29 = vmul.f32 %v662_v26, %v1157_v6  ;;  %v679_v30 = vmul.f32 %v658_v27, %v1145_v0  ;;  %v680_v31 = vmul.f32 %v658_v27, %v1147_v1 }
 0x3c7   : > { %689 = vst [vmem:[%s242_s29 + $0x10] sm:$0xff] %v681_v28  ;;  %690 = vst [vmem:[%s242_s29 + $0x18] sm:$0xff] %v682_v29 }
 0x3c8   : > { %687 = vst [vmem:[%s242_s29] sm:$0xff] %v679_v30  ;;  %688 = vst [vmem:[%s242_s29 + $0x8] sm:$0xff] %v680_v31  ;;  %v666_v32 = vpop.permute.xlu1 %665 }
 0x3c9   : > { %v683_v33 = vmul.f32 %v666_v32, %v1149_v2  ;;  %v684_v5 = vmul.f32 %v666_v32, %v1153_v4 }
 0x3cb   : > { %691 = vst [vmem:[%s242_s29 + $0x20] sm:$0xff] %v683_v33  ;;  %692 = vst [vmem:[%s242_s29 + $0x28] sm:$0xff] %v684_v5 }
 0x3cc   : > { %v670_v0 = vpop.permute.xlu1 %669 }
 0x3cd   : > { %v685_v1 = vmul.f32 %v670_v0, %v1161_v8  ;;  %v686_v2 = vmul.f32 %v670_v0, %v1163_v9 }
 0x3cf   : > { %693 = vst [vmem:[%s242_s29 + $0x30] sm:$0xff] %v685_v1  ;;  %694 = vst [vmem:[%s242_s29 + $0x38] sm:$0xff] %v686_v2 }
 0x3d0   : > { %947 = shalt.err (!%p944_p10)
}
 0x3d1   : > { %s948_s11 = scalar_lea.hbm %s1259_s16, 1024  ;;  %s952_s26 = scalar_lea.hbm %s1309_s5, 2048 }
 0x3d2   : > { %p949_p0 = scmp.ne.s32.totalorder %s1259_s16, %s948_s11  ;;  %p953_p1 = scmp.lt.s32.totalorder %s1259_s16, %s1309_s5 }
 0x3d3   : > { %p954_p3 = scmp.lt.s32.totalorder %s952_s26, %s948_s11 }
 0x3d4   : > { %p950_p2 = pnand %p949_p0, %p1318_p12 }
 0x3d5   : > { %p955_p6 = por %p954_p3, %p953_p1 }
 0x3d6   : > { %p951_p9 = pneg %p950_p2 }
 0x3d8   : > { %p956_p11 = pnand %p955_p6, %p951_p9 }
 0x3da   : > { %959 = shalt.err (!%p956_p11)
}
 0x3db   : > { %s1006_s14 = smov 256   ;;  %s1007_s25 = smov 16  }
 0x3dc   : > { %852 = dma.vmem_to_hbm [thread:$0]  (%p1318_p12), %s1254_s12, 1024, %s1259_s16, %s696_s22, %s1006_s14, %s1006_s14, %s1007_s25  }
 0x3dd PF: > { %s724_s15 = sand.u32 1, %s986_s18   ;;  %p1319_p13 = scmp.ne.s32.totalorder %s1315_s6, 0 }
 0x3de   : > { %p1320_p4 = scmp.ge.s32.totalorder %s998_s21, 2  ;;  %s725_s8 = scalar_lea.sflag [#allocation7], %s724_s15 }
 0x3e0   : > { %p859_p5 = pnand %p1320_p4, %p1319_p13 }
 0x3e2   : > { %p860_p7 = pneg %p859_p5 }
 0x3e4   : > { %981 = dma.done.wait (%p860_p7), %s725_s8, 1024  }
 0x3e5   : > { %983 = vsyncadd (%p860_p7), %s725_s8, 4294966272  ;;  %p18_p8 = scmp.ge.s32.totalorder %s1063_s24, 4   ;;  %s1321_s18 = smov %s990_s19 }
 0x3e6   : > { %s1322_s19 = smov %s994_s20  ;;  %s1323_s20 = smov %s1075_s27 }
 0x3e7   : > { %s1324_s21 = smov %s1063_s24  ;;  %20 = sbr.rel (!%p18_p8) target bundleno = 5 (0x5), region = 85 }
 0x3ec   :  { %730 = vsyncpa [#allocation6], 1 }
 0x3ed   :  { %732 = vsyncpa [#allocation6 + $0x1], 1 }
 0x3ee   :  { %733 = vsyncpa [#allocation7], 1 }
 0x3ef   :  { %735 = vsyncpa [#allocation7 + $0x1], 1 }

</bundles_post_ra>
